<compile_context>
chip_gen: v7x
topology: tpu7x:2x2x1
jax: 0.10.0
libtpu: 0.0.40
codegen_flags: <defaults>
</compile_context>

<pallas_src>
import functools

import jax
import jax.numpy as jnp
from jax.experimental import pallas as pl
from jax.experimental.pallas import tpu as pltpu

LANE = 128  # lane width; every packed weight block is 128x128


# -----------------------------------------------------------------------------
# In-kernel helpers
# -----------------------------------------------------------------------------
def _assemble_x(s_ref, pa_ref, ns_ref, x_scr, dims):
    """Assemble [state | prev_action | next_state | 0...] into a 128-lane row
    inside VMEM scratch (no XLA-side concat/pad HBM round trip)."""
    S, P, NS = dims
    in_dim = S + P + NS
    x_scr[:, 0:S] = s_ref[...]
    x_scr[:, S:S + P] = pa_ref[...]
    x_scr[:, S + P:in_dim] = ns_ref[...]
    if in_dim < LANE:
        # Keep the unused lanes zero so stale VMEM (possibly NaN) never feeds
        # the matmul (0 * NaN = NaN).
        x_scr[:, in_dim:] = jnp.zeros((x_scr.shape[0], LANE - in_dim),
                                      jnp.float32)
    return x_scr[...]


def _mlp_kernel(s_ref, pa_ref, ns_ref, w_ref, b_ref, o_ref, x_scr, *, dims):
    """Non-rbf path: 4 lane-aligned 128-wide matmuls, no in-kernel concat.

    Weight slab blocks (each [128, 128], lane-aligned):
      0: block-diag(ws, wpa, wns)              x   -> z1 = [s | pa | ns | 0]
      1: wm, output packed at lanes 3H2:4H2    z1  -> z1 += m  => [s|pa|ns|m]
      2: wa1 rows placed at (m, ns) lanes      z1  -> h (lanes 0:H)
      3: wa2                                   h   -> action (lanes 0:A)
    """
    f32 = jnp.float32
    relu = lambda v: jnp.maximum(v, 0.0)

    def lin(a, blk):
        lo = blk * LANE
        return (jnp.dot(a, w_ref[:, lo:lo + LANE], preferred_element_type=f32)
                + b_ref[:, lo:lo + LANE])

    x = _assemble_x(s_ref, pa_ref, ns_ref, x_scr, dims)
    z1 = relu(lin(x, 0))            # [s | pa | ns | 0]
    z1 = z1 + relu(lin(z1, 1))      # middle_net lands in the empty lanes -> [s|pa|ns|m]
    h = relu(lin(z1, 2))            # action_net layer 1 on cat(m, ns)
    act = jnp.tanh(lin(h, 3))       # action_net layer 2 + tanh
    o_ref[...] = act[:, :o_ref.shape[1]].astype(o_ref.dtype)


def _rbf_kernel(s_ref, pa_ref, ns_ref, w_ref, b_ref, o_ref, x_scr, *, dims):
    """'rbf' path: action_net(cat(state, prev_action, next_state)), no tanh."""
    f32 = jnp.float32

    def lin(a, blk):
        lo = blk * LANE
        return (jnp.dot(a, w_ref[:, lo:lo + LANE], preferred_element_type=f32)
                + b_ref[:, lo:lo + LANE])

    x = _assemble_x(s_ref, pa_ref, ns_ref, x_scr, dims)
    h = jnp.maximum(lin(x, 0), 0.0)
    out = lin(h, 1)
    o_ref[...] = out[:, :o_ref.shape[1]].astype(o_ref.dtype)


# -----------------------------------------------------------------------------
# Wrapper
# -----------------------------------------------------------------------------
def _round_up(x, m):
    return (x + m - 1) // m * m


def _cdiv(a, b):
    return -(-a // b)


@functools.partial(jax.jit, static_argnames=("action_dim", "net_type"))
def compressed_inverse_model_forward(state, prev_action, next_state,
                                     w_slab, b_slab, *,
                                     action_dim, net_type="mlp"):
    B = state.shape[0]
    S, P, NS = state.shape[1], prev_action.shape[1], next_state.shape[1]
    in_dim = S + P + NS
    assert in_dim <= LANE, "state+prev_action+next_state dims must fit in 128 lanes"
    assert action_dim <= LANE

    # --- batch tiling policy ----------------------------------------------
    # Pad the batch only to a multiple of 8 and pick a tile that divides it,
    # so padding waste stays a handful of rows.  Cap the tile at 2048 rows
    # (big tiles amortize the ~0.35us per-step grid overhead) and force >= 2
    # grid steps for B >= 1024 so both v7x TensorCores get work.
    CAP = 2048
    B8 = _round_up(B, 8)
    n_tiles = max(_cdiv(B8, CAP), 2 if B8 >= 1024 else 1)
    bt = _round_up(_cdiv(B8, n_tiles), 8)
    Bp = n_tiles * bt

    def pad_rows(a):
        a = a.astype(jnp.float32)
        return a if Bp == B else jnp.pad(a, ((0, Bp - B), (0, 0)))

    s = pad_rows(state)
    pa = pad_rows(prev_action)
    ns = pad_rows(next_state)

    n_w = w_slab.shape[1]
    n_b = b_slab.shape[1]
    kern = _rbf_kernel if net_type == "rbf" else _mlp_kernel
    kernel = functools.partial(kern, dims=(S, P, NS))

    cost = pl.CostEstimate(
        flops=2 * Bp * LANE * n_w,
        transcendentals=(0 if net_type == "rbf" else Bp * LANE),
        bytes_accessed=4 * (Bp * (in_dim + action_dim) + LANE * n_w + n_b),
    )

    out = pl.pallas_call(
        kernel,
        out_shape=jax.ShapeDtypeStruct((Bp, action_dim), jnp.float32),
        grid=(n_tiles,),
        in_specs=[
            pl.BlockSpec((bt, S), lambda i: (i, 0)),       # state
            pl.BlockSpec((bt, P), lambda i: (i, 0)),       # prev_action
            pl.BlockSpec((bt, NS), lambda i: (i, 0)),      # next_state
            pl.BlockSpec((LANE, n_w), lambda i: (0, 0)),   # weight slab (resident)
            pl.BlockSpec((1, n_b), lambda i: (0, 0)),      # bias slab   (resident)
        ],
        out_specs=pl.BlockSpec((bt, action_dim), lambda i: (i, 0)),
        scratch_shapes=[pltpu.VMEM((bt, LANE), jnp.float32)],
        compiler_params=pltpu.CompilerParams(
            dimension_semantics=("parallel",),
            vmem_limit_bytes=32 * 1024 * 1024,
        ),
        cost_estimate=cost,
    )(s, pa, ns, w_slab, b_slab)

    return out[:B] if Bp != B else out


# -----------------------------------------------------------------------------
# Parameter init (PyTorch nn.Linear default init) and packing
# -----------------------------------------------------------------------------
def init_params(key, state_dim, prev_action_dim, next_state_dim,
                hidden_dim, action_dim):
    h2 = hidden_dim // 2
    keys = jax.random.split(key, 12)

    def linear(kw, kb, d_in, d_out):
        bound = 1.0 / jnp.sqrt(jnp.float32(d_in))
        w = jax.random.uniform(kw, (d_in, d_out), jnp.float32, -bound, bound)
        b = jax.random.uniform(kb, (1, d_out), jnp.float32, -bound, bound)
        return w, b

    ws, bs = linear(keys[0], keys[1], state_dim, h2)
    wpa, bpa = linear(keys[2], keys[3], prev_action_dim, h2)
    wm, bm = linear(keys[4], keys[5], hidden_dim, h2)
    wns, bns = linear(keys[6], keys[7], next_state_dim, h2)
    wa1, ba1 = linear(keys[8], keys[9], hidden_dim, hidden_dim)
    wa2, ba2 = linear(keys[10], keys[11], hidden_dim, action_dim)
    return dict(ws=ws, bs=bs, wpa=wpa, bpa=bpa, wm=wm, bm=bm,
                wns=wns, bns=bns, wa1=wa1, ba1=ba1, wa2=wa2, ba2=ba2)


def pack_mlp_params(p):
    """Pack the 6 Linear layers into one [128, 512] slab + [1, 512] bias row
    (4 lane-aligned 128x128 blocks)."""
    S, H2 = p["ws"].shape
    P = p["wpa"].shape[0]
    NS = p["wns"].shape[0]
    H = 2 * H2
    A = p["wa2"].shape[1]
    assert S + P + NS <= LANE, "concatenated input must fit in 128 lanes"
    assert 4 * H2 <= LANE, "need 2*hidden_dim <= 128 for the fused lane layout"
    assert A <= LANE

    W = jnp.zeros((LANE, 4 * LANE), jnp.float32)
    b = jnp.zeros((1, 4 * LANE), jnp.float32)

    # block 0: fused block-diagonal first layer -> z1 = [s | pa | ns | 0]
    W = W.at[0:S, 0:H2].set(p["ws"])
    W = W.at[S:S + P, H2:2 * H2].set(p["wpa"])
    W = W.at[S + P:S + P + NS, 2 * H2:3 * H2].set(p["wns"])
    b = b.at[0, 0:H2].set(p["bs"][0])
    b = b.at[0, H2:2 * H2].set(p["bpa"][0])
    b = b.at[0, 2 * H2:3 * H2].set(p["bns"][0])

    # block 1: middle_net on z1[:, 0:H] = cat(s, pa); its output is packed at
    # lanes 3H2:4H2 so z1 + relu(z1 @ W1 + b1) == [s | pa | ns | m] directly.
    c = LANE
    W = W.at[0:H, c + 3 * H2:c + 4 * H2].set(p["wm"])
    b = b.at[0, c + 3 * H2:c + 4 * H2].set(p["bm"][0])

    # block 2: action_net layer-1 on cat(m, ns): wa1's m-rows sit at z1 lanes
    # 3H2:4H2, ns-rows at lanes 2H2:3H2.  Output -> lanes 0:H.
    c = 2 * LANE
    W = W.at[3 * H2:4 * H2, c:c + H].set(p["wa1"][0:H2])   # m rows
    W = W.at[2 * H2:3 * H2, c:c + H].set(p["wa1"][H2:H])   # ns rows
    b = b.at[0, c:c + H].set(p["ba1"][0])

    # block 3: action_net layer-2.  Output -> lanes 0:A.
    c = 3 * LANE
    W = W.at[0:H, c:c + A].set(p["wa2"])
    b = b.at[0, c:c + A].set(p["ba2"][0])
    return W, b


def pack_rbf_params(p, in_dim):
    """'rbf' branch uses only action_net on the raw concatenated inputs."""
    H = p["wa1"].shape[0]
    A = p["wa2"].shape[1]
    assert in_dim == H, ("'rbf' path requires state+prev_action+next_state "
                         "dim == action_net input dim")
    assert H <= LANE and A <= LANE
    W = jnp.zeros((LANE, 2 * LANE), jnp.float32)
    b = jnp.zeros((1, 2 * LANE), jnp.float32)
    W = W.at[0:H, 0:H].set(p["wa1"])
    b = b.at[0, 0:H].set(p["ba1"][0])
    W = W.at[0:H, LANE:LANE + A].set(p["wa2"])
    b = b.at[0, LANE:LANE + A].set(p["ba2"][0])
    return W, b


# -----------------------------------------------------------------------------
# Pure-JAX references (mirror the PyTorch forward)
# -----------------------------------------------------------------------------
def reference_forward_mlp(state, prev_action, next_state, p):
    relu = lambda x: jnp.maximum(x, 0.0)
    s = relu(state @ p["ws"] + p["bs"])
    pa = relu(prev_action @ p["wpa"] + p["bpa"])
    m = relu(jnp.concatenate([s, pa], -1) @ p["wm"] + p["bm"])
    ns = relu(next_state @ p["wns"] + p["bns"])
    h = relu(jnp.concatenate([m, ns], -1) @ p["wa1"] + p["ba1"])
    return jnp.tanh(h @ p["wa2"] + p["ba2"])


def reference_forward_rbf(state, prev_action, next_state, p):
    x = jnp.concatenate([state, prev_action, next_state], -1)
    h = jnp.maximum(x @ p["wa1"] + p["ba1"], 0.0)
    return h @ p["wa2"] + p["ba2"]


if __name__ == "__main__":
    # state_dim + prev_action_dim + next_state_dim == hidden_dim so the 'rbf'
    # branch (action_net on the raw concat) is well-formed too.
    # TODO(synk): the PyTorch `_format` scalar->tensor/unsqueeze coercion is
    # host-side glue; inputs here are assumed to already be batched arrays.
    B, STATE_DIM, PREV_ACTION_DIM, NEXT_STATE_DIM = 8, 12, 4, 16
    HIDDEN_DIM, ACTION_DIM = 32, 4

    key = jax.random.PRNGKey(0)
    k_p, k_s, k_pa, k_ns, k_s2, k_pa2, k_ns2 = jax.random.split(key, 7)

    params = init_params(k_p, STATE_DIM, PREV_ACTION_DIM, NEXT_STATE_DIM,
                         HIDDEN_DIM, ACTION_DIM)
    w_mlp, b_mlp = pack_mlp_params(params)
    w_rbf, b_rbf = pack_rbf_params(
        params, STATE_DIM + PREV_ACTION_DIM + NEXT_STATE_DIM)

    state = jax.random.normal(k_s, (B, STATE_DIM), jnp.float32)
    prev_action = jax.random.normal(k_pa, (B, PREV_ACTION_DIM), jnp.float32)
    next_state = jax.random.normal(k_ns, (B, NEXT_STATE_DIM), jnp.float32)

    # Default (non-rbf) path: value-check against pure-JAX reference.
    action = compressed_inverse_model_forward(
        state, prev_action, next_state, w_mlp, b_mlp,
        action_dim=ACTION_DIM, net_type="mlp")
    action = jax.block_until_ready(action)
    ref = reference_forward_mlp(state, prev_action, next_state, params)
    assert action.shape == (B, ACTION_DIM)
    assert jnp.allclose(action, ref, atol=1e-5, rtol=1e-5)

    # 'rbf' path: value-checked too (concat order + no tanh).
    action_rbf = compressed_inverse_model_forward(
        state, prev_action, next_state, w_rbf, b_rbf,
        action_dim=ACTION_DIM, net_type="rbf")
    action_rbf = jax.block_until_ready(action_rbf)
    ref_rbf = reference_forward_rbf(state, prev_action, next_state, params)
    assert action_rbf.shape == (B, ACTION_DIM)
    assert jnp.allclose(action_rbf, ref_rbf, atol=1e-5, rtol=1e-5)

    # Larger / ragged batch: exercises the multi-tile grid (>=2 steps for v7x)
    # and the minimal-padding policy (B=1037 -> 2 tiles of 520 rows).
    B2 = 1037
    state2 = jax.random.normal(k_s2, (B2, STATE_DIM), jnp.float32)
    prev_action2 = jax.random.normal(k_pa2, (B2, PREV_ACTION_DIM), jnp.float32)
    next_state2 = jax.random.normal(k_ns2, (B2, NEXT_STATE_DIM), jnp.float32)
    action2 = compressed_inverse_model_forward(
        state2, prev_action2, next_state2, w_mlp, b_mlp,
        action_dim=ACTION_DIM, net_type="mlp")
    action2 = jax.block_until_ready(action2)
    ref2 = reference_forward_mlp(state2, prev_action2, next_state2, params)
    assert action2.shape == (B2, ACTION_DIM)
    assert jnp.allclose(action2, ref2, atol=1e-5, rtol=1e-5)

    print("KERNEL_OK")
</pallas_src>

<mosaic_0001>
module attributes {stable_mosaic.version = 11 : i64} {
  func.func @_mlp_kernel(%arg0: i32, %arg1: memref<8x12xf32, #tpu.memory_space<vmem>>, %arg2: memref<8x4xf32, #tpu.memory_space<vmem>>, %arg3: memref<8x16xf32, #tpu.memory_space<vmem>>, %arg4: memref<128x512xf32, #tpu.memory_space<vmem>>, %arg5: memref<1x512xf32, #tpu.memory_space<vmem>>, %arg6: memref<8x4xf32, #tpu.memory_space<vmem>>, %arg7: memref<8x128xf32, #tpu.memory_space<vmem>>) attributes {dimension_semantics = [#tpu.dimension_semantics<parallel>], iteration_bounds = array<i64: 1>, scalar_prefetch = 0 : i64, scratch_operands = 1 : i64, tpu.core_type = #tpu.core_type<tc>, window_params = [{transform_indices = @transform_0, window_bounds = array<i64: 8, 12>}, {transform_indices = @transform_1, window_bounds = array<i64: 8, 4>}, {transform_indices = @transform_2, window_bounds = array<i64: 8, 16>}, {pipeline_mode = #tpu.pipeline_mode<synchronous>, transform_indices = @transform_3, window_bounds = array<i64: 128, 512>}, {pipeline_mode = #tpu.pipeline_mode<synchronous>, transform_indices = @transform_4, window_bounds = array<i64: 1, 512>}, {transform_indices = @transform_5, window_bounds = array<i64: 8, 4>}]} {
    %c0 = arith.constant 0 : index
    %c0_0 = arith.constant 0 : index
    %0 = vector.load %arg1[%c0, %c0_0] : memref<8x12xf32, #tpu.memory_space<vmem>>, vector<8x12xf32>
    %c0_1 = arith.constant 0 : index
    %c0_2 = arith.constant 0 : index
    %1 = vector.load %arg7[%c0_1, %c0_2] : memref<8x128xf32, #tpu.memory_space<vmem>>, vector<8x12xf32>
    tpu.vector_store %arg7[%c0_1, %c0_2], %0 {strides = array<i32>} : memref<8x128xf32, #tpu.memory_space<vmem>>, vector<8x12xf32>,
    %c0_3 = arith.constant 0 : index
    %c0_4 = arith.constant 0 : index
    %2 = vector.load %arg2[%c0_3, %c0_4] : memref<8x4xf32, #tpu.memory_space<vmem>>, vector<8x4xf32>
    %c0_5 = arith.constant 0 : index
    %c12 = arith.constant 12 : index
    %3 = vector.load %arg7[%c0_5, %c12] : memref<8x128xf32, #tpu.memory_space<vmem>>, vector<8x4xf32>
    tpu.vector_store %arg7[%c0_5, %c12], %2 {strides = array<i32>} : memref<8x128xf32, #tpu.memory_space<vmem>>, vector<8x4xf32>,
    %c0_6 = arith.constant 0 : index
    %c0_7 = arith.constant 0 : index
    %4 = vector.load %arg3[%c0_6, %c0_7] : memref<8x16xf32, #tpu.memory_space<vmem>>, vector<8x16xf32>
    %c0_8 = arith.constant 0 : index
    %c16 = arith.constant 16 : index
    %5 = vector.load %arg7[%c0_8, %c16] : memref<8x128xf32, #tpu.memory_space<vmem>>, vector<8x16xf32>
    tpu.vector_store %arg7[%c0_8, %c16], %4 {strides = array<i32>} : memref<8x128xf32, #tpu.memory_space<vmem>>, vector<8x16xf32>,
    %cst = arith.constant 0.000000e+00 : f32
    %6 = vector.broadcast %cst : f32 to vector<8x96xf32>
    %c0_9 = arith.constant 0 : index
    %c32 = arith.constant 32 : index
    %7 = vector.load %arg7[%c0_9, %c32] : memref<8x128xf32, #tpu.memory_space<vmem>>, vector<8x96xf32>
    tpu.vector_store %arg7[%c0_9, %c32], %6 {strides = array<i32>} : memref<8x128xf32, #tpu.memory_space<vmem>>, vector<8x96xf32>,
    %c0_10 = arith.constant 0 : index
    %c0_11 = arith.constant 0 : index
    %8 = vector.load %arg7[%c0_10, %c0_11] : memref<8x128xf32, #tpu.memory_space<vmem>>, vector<8x128xf32>
    %c0_12 = arith.constant 0 : index
    %c0_13 = arith.constant 0 : index
    %9 = vector.load %arg4[%c0_12, %c0_13] : memref<128x512xf32, #tpu.memory_space<vmem>>, vector<128x128xf32>
    %cst_14 = arith.constant dense<0.000000e+00> : vector<8x128xf32>
    %10 = tpu.matmul %8, %9, %cst_14 {dimension_numbers = #tpu.dot_dimension_numbers<[1], [0], [0], [1], [0, 0, 1, 1], [], []>} : vector<8x128xf32>, vector<128x128xf32>, vector<8x128xf32> -> vector<8x128xf32>
    %c0_15 = arith.constant 0 : index
    %c0_16 = arith.constant 0 : index
    %11 = vector.load %arg5[%c0_15, %c0_16] : memref<1x512xf32, #tpu.memory_space<vmem>>, vector<1x128xf32>
    %12 = vector.broadcast %11 : vector<1x128xf32> to vector<8x128xf32>
    %13 = arith.addf %10, %12 : vector<8x128xf32>
    %cst_17 = arith.constant 0.000000e+00 : f32
    %14 = vector.broadcast %cst_17 : f32 to vector<8x128xf32>
    %15 = arith.maximumf %13, %14 : vector<8x128xf32>
    %c0_18 = arith.constant 0 : index
    %c128 = arith.constant 128 : index
    %16 = vector.load %arg4[%c0_18, %c128] : memref<128x512xf32, #tpu.memory_space<vmem>>, vector<128x128xf32>
    %cst_19 = arith.constant dense<0.000000e+00> : vector<8x128xf32>
    %17 = tpu.matmul %15, %16, %cst_19 {dimension_numbers = #tpu.dot_dimension_numbers<[1], [0], [0], [1], [0, 0, 1, 1], [], []>} : vector<8x128xf32>, vector<128x128xf32>, vector<8x128xf32> -> vector<8x128xf32>
    %c0_20 = arith.constant 0 : index
    %c128_21 = arith.constant 128 : index
    %18 = vector.load %arg5[%c0_20, %c128_21] : memref<1x512xf32, #tpu.memory_space<vmem>>, vector<1x128xf32>
    %19 = vector.broadcast %18 : vector<1x128xf32> to vector<8x128xf32>
    %20 = arith.addf %17, %19 : vector<8x128xf32>
    %cst_22 = arith.constant 0.000000e+00 : f32
    %21 = vector.broadcast %cst_22 : f32 to vector<8x128xf32>
    %22 = arith.maximumf %20, %21 : vector<8x128xf32>
    %23 = arith.addf %15, %22 : vector<8x128xf32>
    %c0_23 = arith.constant 0 : index
    %c256 = arith.constant 256 : index
    %24 = vector.load %arg4[%c0_23, %c256] : memref<128x512xf32, #tpu.memory_space<vmem>>, vector<128x128xf32>
    %cst_24 = arith.constant dense<0.000000e+00> : vector<8x128xf32>
    %25 = tpu.matmul %23, %24, %cst_24 {dimension_numbers = #tpu.dot_dimension_numbers<[1], [0], [0], [1], [0, 0, 1, 1], [], []>} : vector<8x128xf32>, vector<128x128xf32>, vector<8x128xf32> -> vector<8x128xf32>
    %c0_25 = arith.constant 0 : index
    %c256_26 = arith.constant 256 : index
    %26 = vector.load %arg5[%c0_25, %c256_26] : memref<1x512xf32, #tpu.memory_space<vmem>>, vector<1x128xf32>
    %27 = vector.broadcast %26 : vector<1x128xf32> to vector<8x128xf32>
    %28 = arith.addf %25, %27 : vector<8x128xf32>
    %cst_27 = arith.constant 0.000000e+00 : f32
    %29 = vector.broadcast %cst_27 : f32 to vector<8x128xf32>
    %30 = arith.maximumf %28, %29 : vector<8x128xf32>
    %c0_28 = arith.constant 0 : index
    %c384 = arith.constant 384 : index
    %31 = vector.load %arg4[%c0_28, %c384] : memref<128x512xf32, #tpu.memory_space<vmem>>, vector<128x128xf32>
    %cst_29 = arith.constant dense<0.000000e+00> : vector<8x128xf32>
    %32 = tpu.matmul %30, %31, %cst_29 {dimension_numbers = #tpu.dot_dimension_numbers<[1], [0], [0], [1], [0, 0, 1, 1], [], []>} : vector<8x128xf32>, vector<128x128xf32>, vector<8x128xf32> -> vector<8x128xf32>
    %c0_30 = arith.constant 0 : index
    %c384_31 = arith.constant 384 : index
    %33 = vector.load %arg5[%c0_30, %c384_31] : memref<1x512xf32, #tpu.memory_space<vmem>>, vector<1x128xf32>
    %34 = vector.broadcast %33 : vector<1x128xf32> to vector<8x128xf32>
    %35 = arith.addf %32, %34 : vector<8x128xf32>
    %36 = math.tanh %35 : vector<8x128xf32>
    %37 = vector.extract_strided_slice %36 {offsets = [0, 0], sizes = [8, 4], strides = [1, 1]} : vector<8x128xf32> to vector<8x4xf32>
    %c0_32 = arith.constant 0 : index
    %c0_33 = arith.constant 0 : index
    %38 = vector.load %arg6[%c0_32, %c0_33] : memref<8x4xf32, #tpu.memory_space<vmem>>, vector<8x4xf32>
    tpu.vector_store %arg6[%c0_32, %c0_33], %37 {strides = array<i32>} : memref<8x4xf32, #tpu.memory_space<vmem>>, vector<8x4xf32>,
    return
  }
  func.func @transform_0(%arg0: i32) -> (i32, i32) {
    %c0_i32 = arith.constant 0 : i32
    %c0_i32_0 = arith.constant 0 : i32
    return %arg0, %c0_i32 : i32, i32
  }
  func.func @transform_1(%arg0: i32) -> (i32, i32) {
    %c0_i32 = arith.constant 0 : i32
    %c0_i32_0 = arith.constant 0 : i32
    return %arg0, %c0_i32 : i32, i32
  }
  func.func @transform_2(%arg0: i32) -> (i32, i32) {
    %c0_i32 = arith.constant 0 : i32
    %c0_i32_0 = arith.constant 0 : i32
    return %arg0, %c0_i32 : i32, i32
  }
  func.func @transform_3(%arg0: i32) -> (i32, i32) {
    %c0_i32 = arith.constant 0 : i32
    %c0_i32_0 = arith.constant 0 : i32
    %c0_i32_1 = arith.constant 0 : i32
    return %c0_i32, %c0_i32_0 : i32, i32
  }
  func.func @transform_4(%arg0: i32) -> (i32, i32) {
    %c0_i32 = arith.constant 0 : i32
    %c0_i32_0 = arith.constant 0 : i32
    %c0_i32_1 = arith.constant 0 : i32
    return %c0_i32, %c0_i32_0 : i32, i32
  }
  func.func @transform_5(%arg0: i32) -> (i32, i32) {
    %c0_i32 = arith.constant 0 : i32
    %c0_i32_0 = arith.constant 0 : i32
    return %arg0, %c0_i32 : i32, i32
  }
}

</mosaic_0001>

<bundles_post_ra>
// kernel: compressed_inverse_model_forward.1
= control target key start
LH: loop header
LB: loop body
LE: loop exit
PB: predicated region body
PF: predicated region fallthrough
CT: control target
= control target key end

     0   :  { %10 = vsyncpa [#allocation4], 0  ;;  %s780_s18 = smov [#allocation3]   ;;  %s895_s0 = inlined_call_operand.vmem [shape: f32[8,12], index: 0, kind: input, shape index: {}]   ;;  %s896_s1 = inlined_call_operand.vmem [shape: f32[8,4], index: 1, kind: input, shape index: {}]   ;;  %s897_s2 = inlined_call_operand.vmem [shape: f32[8,16], index: 2, kind: input, shape index: {}]   ;;  %s898_s3 = inlined_call_operand.hbm [shape: f32[128,512], index: 3, kind: input, shape index: {}]   ;;  %s899_s4 = inlined_call_operand.vmem [shape: f32[1,512], index: 4, kind: input, shape index: {}]   ;;  %s900_s5 = inlined_call_operand.vmem [shape: f32[8,4], index: 5, kind: output, shape index: {}]  }
   0x1   :  { %s22_s19 = sshll.u32 %s780_s18, 4  ;;  %s756_s22 = scalar_lea.hbm %s898_s3, 8192  ;;  %s23_s19 = int_to_ptr.vmem [resolvable:$true] %s22_s19 }
   0x2   :  { %p757_p0 = scmp.ne.s32.totalorder %s898_s3, %s756_s22  ;;  %p760_p1 = scmp.lt.u32.totalorder %s756_s22, %s898_s3 }
   0x4   :  { %p762_p2 = pnand %p760_p1, %p757_p0 }
   0x6   :  { %765 = shalt.err (!%p762_p2)
}
   0x7   :  { %s766_s27 = scalar_lea.vmem %s23_s19, 8192  ;;  %p771_p4 = scmp.lt.s32.totalorder %s23_s19, %s23_s19 }
   0x8   :  { %p767_p3 = scmp.ne.s32.totalorder %s23_s19, %s766_s27  ;;  %p772_p5 = scmp.lt.s32.totalorder %s766_s27, %s766_s27 }
   0xa   :  { %p773_p6 = por %p772_p5, %p771_p4 }
   0xc   :  { %p774_p7 = pnand %p773_p6, %p767_p3 }
   0xe   :  { %777 = shalt.err (!%p774_p7)
}
   0xf   :  { %s781_s28 = smov 512   ;;  %s782_s29 = smov 32  }
  0x10   :  { %28 = dma.hbm_to_vmem [thread:$0]  %s898_s3, 8192, %s23_s19, [#allocation4], %s781_s28, %s781_s28, %s782_s29  }
  0x11   :  { %778 = dma.done.wait [#allocation4], 8192  }
  0x12   :  { %779 = vsyncadd [#allocation4], 4294959104  ;;  %v783_v0 = vmov 0.0|0.0   ;;  %vm784_vm0 = vmmov 0   ;;  %v785_v1 = vmov 0.0   ;;  %v37_v2 = vld [vmem:[%s896_s1] sm:$0xff] }
  0x13   :  { %650 = vmatprep.subr.bf16.mxu0 %v783_v0  ;;  %674 = vmatprep.subr.bf16.mxu1 %v783_v0  ;;  %v54_v3 = vld [vmem:[#allocation3] sm:$0xff]  ;;  %s786_s3 = smov 12   ;;  %v44_v7 = vld [vmem:[%s897_s2] sm:$0xff]  ;;  %vm35_vm1 = vcmask 97280   ;;  %s787_s13 = smov 16   ;;  %v148_v13 = vld [vmem:[#allocation3 + $0x8] sm:$0xff] }
  0x14   :  { %542 = vmatprep.mubr.msk.f32.mxu0 %vm784_vm0, %v785_v1  ;;  %577 = vmatprep.mubr.msk.f32.mxu1 %vm784_vm0, %v785_v1  ;;  %v55_v4 = vld [vmem:[#allocation3 + $0x20] sm:$0xff]  ;;  %v34_v10 = vld [vmem:[%s895_s0] sm:$0xff]  ;;  %v149_v14 = vld [vmem:[#allocation3 + $0x28] sm:$0xff]  ;;  %vm42_vm2 = vcmask 130144   ;;  %vm49_vm3 = vcmask 261248   ;;  %vm51_vm4 = vcmask 1047808  }
  0x15   :  { %39 = vrot.lane.b32.xlu0 %v37_v2, %s786_s3  ;;  %v56_v5 = vld [vmem:[#allocation3 + $0x40] sm:$0xff]  ;;  %v651_v8 = vpack.c.bf16 %v55_v4, %v54_v3  ;;  %36 = vst.msk [vmem:[#allocation2] sm:$0xff] %vm35_vm1, %v34_v10  ;;  %v675_v15 = vpack.c.bf16 %v149_v14, %v148_v13  ;;  %v150_v16 = vld [vmem:[#allocation3 + $0x48] sm:$0xff]  ;;  %v243_v56 = vld [vmem:[#allocation3 + $0x10] sm:$0xff]  ;;  %vm431_vm5 = vcmask 31744  }
  0x16   :  { %v57_v6 = vld [vmem:[#allocation3 + $0x60] sm:$0xff]  ;;  %v151_v17 = vld [vmem:[#allocation3 + $0x68] sm:$0xff]  ;;  %v244_v57 = vld [vmem:[#allocation3 + $0x30] sm:$0xff] }
  0x17   :  { %652 = vmatpush3.bf16.msra.mxu0 %v651_v8  ;;  %v654_v9 = vpack.c.bf16 %v57_v6, %v56_v5  ;;  %v58_v11 = vld [vmem:[#allocation3 + $0x80] sm:$0xff]  ;;  %676 = vmatpush3.bf16.msra.mxu1 %v675_v15  ;;  %v678_v21 = vpack.c.bf16 %v151_v17, %v150_v16  ;;  %v152_v22 = vld [vmem:[#allocation3 + $0x88] sm:$0xff]  ;;  %v245_v58 = vld [vmem:[#allocation3 + $0x50] sm:$0xff]  ;;  %v699_v59 = vpack.c.bf16 %v244_v57, %v243_v56 }
  0x18   :  { %653 = vmatprep.subr.bf16.mxu0 %v783_v0  ;;  %v59_v12 = vld [vmem:[#allocation3 + $0xa0] sm:$0xff]  ;;  %677 = vmatprep.subr.bf16.mxu1 %v783_v0  ;;  %v153_v23 = vld [vmem:[#allocation3 + $0xa8] sm:$0xff]  ;;  %v246_v60 = vld [vmem:[#allocation3 + $0x70] sm:$0xff] }
  0x19   :  { %46 = vrot.lane.b32.xlu0 %v44_v7, %s787_s13  ;;  %v657_v18 = vpack.c.bf16 %v59_v12, %v58_v11  ;;  %v60_v19 = vld [vmem:[#allocation3 + $0xc0] sm:$0xff]  ;;  %v681_v27 = vpack.c.bf16 %v153_v23, %v152_v22  ;;  %v154_v28 = vld [vmem:[#allocation3 + $0xc8] sm:$0xff]  ;;  %v702_v61 = vpack.c.bf16 %v246_v60, %v245_v58  ;;  %v247_v62 = vld [vmem:[#allocation3 + $0x90] sm:$0xff] }
  0x1a   :  { %v61_v20 = vld [vmem:[#allocation3 + $0xe0] sm:$0xff]  ;;  %v155_v29 = vld [vmem:[#allocation3 + $0xe8] sm:$0xff]  ;;  %v248_v63 = vld [vmem:[#allocation3 + $0xb0] sm:$0xff] }
  0x1b   :  { %655 = vmatpush3.bf16.msra.mxu0 %v654_v9  ;;  %v660_v24 = vpack.c.bf16 %v61_v20, %v60_v19  ;;  %v62_v25 = vld [vmem:[#allocation3 + $0x100] sm:$0xff]  ;;  %679 = vmatpush3.bf16.msra.mxu1 %v678_v21  ;;  %v684_v33 = vpack.c.bf16 %v155_v29, %v154_v28  ;;  %v156_v34 = vld [vmem:[#allocation3 + $0x108] sm:$0xff]  ;;  %v705_v2 = vpack.c.bf16 %v248_v63, %v247_v62  ;;  %v249_v3 = vld [vmem:[#allocation3 + $0xd0] sm:$0xff] }
  0x1c   :  { %656 = vmatprep.subr.bf16.mxu0 %v783_v0  ;;  %v63_v26 = vld [vmem:[#allocation3 + $0x120] sm:$0xff]  ;;  %680 = vmatprep.subr.bf16.mxu1 %v783_v0  ;;  %v157_v35 = vld [vmem:[#allocation3 + $0x128] sm:$0xff]  ;;  %v250_v4 = vld [vmem:[#allocation3 + $0xf0] sm:$0xff] }
  0x1d   :  { %v663_v30 = vpack.c.bf16 %v63_v26, %v62_v25  ;;  %v64_v31 = vld [vmem:[#allocation3 + $0x140] sm:$0xff]  ;;  %v687_v39 = vpack.c.bf16 %v157_v35, %v156_v34  ;;  %v158_v40 = vld [vmem:[#allocation3 + $0x148] sm:$0xff]  ;;  %v708_v5 = vpack.c.bf16 %v250_v4, %v249_v3  ;;  %v251_v6 = vld [vmem:[#allocation3 + $0x110] sm:$0xff] }
  0x1e   :  { %v65_v32 = vld [vmem:[#allocation3 + $0x160] sm:$0xff]  ;;  %v159_v41 = vld [vmem:[#allocation3 + $0x168] sm:$0xff]  ;;  %v252_v7 = vld [vmem:[#allocation3 + $0x130] sm:$0xff] }
  0x1f   :  { %658 = vmatpush3.bf16.msra.mxu0 %v657_v18  ;;  %682 = vmatpush3.bf16.msra.mxu1 %v681_v27  ;;  %v666_v36 = vpack.c.bf16 %v65_v32, %v64_v31  ;;  %v66_v37 = vld [vmem:[#allocation3 + $0x180] sm:$0xff]  ;;  %v690_v45 = vpack.c.bf16 %v159_v41, %v158_v40  ;;  %v160_v46 = vld [vmem:[#allocation3 + $0x188] sm:$0xff]  ;;  %v711_v8 = vpack.c.bf16 %v252_v7, %v251_v6  ;;  %v253_v9 = vld [vmem:[#allocation3 + $0x150] sm:$0xff] }
  0x20   :  { %659 = vmatprep.subr.bf16.mxu0 %v783_v0  ;;  %683 = vmatprep.subr.bf16.mxu1 %v783_v0  ;;  %v67_v38 = vld [vmem:[#allocation3 + $0x1a0] sm:$0xff]  ;;  %v161_v47 = vld [vmem:[#allocation3 + $0x1a8] sm:$0xff]  ;;  %v254_v10 = vld [vmem:[#allocation3 + $0x170] sm:$0xff] }
  0x21   :  { %v669_v42 = vpack.c.bf16 %v67_v38, %v66_v37  ;;  %v68_v43 = vld [vmem:[#allocation3 + $0x1c0] sm:$0xff]  ;;  %v693_v49 = vpack.c.bf16 %v161_v47, %v160_v46  ;;  %v162_v53 = vld [vmem:[#allocation3 + $0x1c8] sm:$0xff]  ;;  %v714_v11 = vpack.c.bf16 %v254_v10, %v253_v9  ;;  %v438_v12 = vld [vmem:[%s899_s4] ss:$0 sm:$0xff] }
  0x22   :  { %v69_v44 = vld [vmem:[#allocation3 + $0x1e0] sm:$0xff]  ;;  %v163_v54 = vld [vmem:[#allocation3 + $0x1e8] sm:$0xff]  ;;  %v255_v17 = vld [vmem:[#allocation3 + $0x190] sm:$0xff] }
  0x23   :  { %661 = vmatpush3.bf16.msra.mxu0 %v660_v24  ;;  %685 = vmatpush3.bf16.msra.mxu1 %v684_v33  ;;  %v672_v48 = vpack.c.bf16 %v69_v44, %v68_v43  ;;  %v696_v55 = vpack.c.bf16 %v163_v54, %v162_v53  ;;  %v256_v18 = vld [vmem:[#allocation3 + $0x1b0] sm:$0xff]  ;;  %v337_v23 = vld [vmem:[#allocation3 + $0x18] sm:$0xff] }
  0x24   :  { %662 = vmatprep.subr.bf16.mxu0 %v783_v0  ;;  %686 = vmatprep.subr.bf16.mxu1 %v783_v0  ;;  %v717_v19 = vpack.c.bf16 %v256_v18, %v255_v17  ;;  %v257_v20 = vld [vmem:[#allocation3 + $0x1d0] sm:$0xff]  ;;  %v338_v24 = vld [vmem:[#allocation3 + $0x38] sm:$0xff] }
  0x25   :  { %v258_v21 = vld [vmem:[#allocation3 + $0x1f0] sm:$0xff]  ;;  %v339_v25 = vld [vmem:[#allocation3 + $0x58] sm:$0xff]  ;;  %v723_v26 = vpack.c.bf16 %v338_v24, %v337_v23 }
  0x26   :  { %v720_v22 = vpack.c.bf16 %v258_v21, %v257_v20  ;;  %v340_v27 = vld [vmem:[#allocation3 + $0x78] sm:$0xff] }
  0x27   :  { %664 = vmatpush3.bf16.msra.mxu0 %v663_v30  ;;  %688 = vmatpush3.bf16.msra.mxu1 %v687_v39  ;;  %v726_v28 = vpack.c.bf16 %v340_v27, %v339_v25  ;;  %v342_v29 = vld [vmem:[#allocation3 + $0xb8] sm:$0xff] }
  0x28   :  { %665 = vmatprep.subr.bf16.mxu0 %v783_v0  ;;  %689 = vmatprep.subr.bf16.mxu1 %v783_v0  ;;  %v343_v31 = vld [vmem:[#allocation3 + $0xd8] sm:$0xff] }
  0x29   :  { %v344_v32 = vld [vmem:[#allocation3 + $0xf8] sm:$0xff] }
  0x2a   :  { %v732_v33 = vpack.c.bf16 %v344_v32, %v343_v31  ;;  %v345_v34 = vld [vmem:[#allocation3 + $0x118] sm:$0xff] }
  0x2b   :  { %667 = vmatpush3.bf16.msra.mxu0 %v666_v36  ;;  %691 = vmatpush3.bf16.msra.mxu1 %v690_v45  ;;  %v346_v35 = vld [vmem:[#allocation3 + $0x138] sm:$0xff] }
  0x2c   :  { %668 = vmatprep.subr.bf16.mxu0 %v783_v0  ;;  %692 = vmatprep.subr.bf16.mxu1 %v783_v0  ;;  %v735_v36 = vpack.c.bf16 %v346_v35, %v345_v34  ;;  %v347_v37 = vld [vmem:[#allocation3 + $0x158] sm:$0xff] }
  0x2d   :  { %v348_v38 = vld [vmem:[#allocation3 + $0x178] sm:$0xff] }
  0x2e   :  { %v738_v39 = vpack.c.bf16 %v348_v38, %v347_v37  ;;  %v349_v40 = vld [vmem:[#allocation3 + $0x198] sm:$0xff] }
  0x2f   :  { %670 = vmatpush3.bf16.msra.mxu0 %v669_v42  ;;  %694 = vmatpush3.bf16.msra.mxu1 %v693_v49  ;;  %v350_v41 = vld [vmem:[#allocation3 + $0x1b8] sm:$0xff] }
  0x30   :  { %671 = vmatprep.subr.bf16.mxu0 %v783_v0  ;;  %695 = vmatprep.subr.bf16.mxu1 %v783_v0  ;;  %v741_v42 = vpack.c.bf16 %v350_v41, %v349_v40  ;;  %v439_v43 = vld [vmem:[%s899_s4 + $0x1] ss:$0 sm:$0xff]  ;;  %v441_v56 = vld [vmem:[%s899_s4 + $0x3] ss:$0 sm:$0xff] }
  0x31   :  { %v351_v49 = vld [vmem:[#allocation3 + $0x1d8] sm:$0xff] }
  0x33   :  { %673 = vmatpush3.bf16.msra.mxu0 %v672_v48  ;;  %697 = vmatpush3.bf16.msra.mxu1 %v696_v55 }
  0x34   :  { %698 = vmatprep.subr.bf16.mxu0 %v783_v0  ;;  %722 = vmatprep.subr.bf16.mxu1 %v783_v0 }
  0x87   :  { %v40_v50 = vpop.permute.xlu0 %39 }
  0x88   :  { %43 = vst.msk [vmem:[#allocation2] sm:$0xff] %vm42_vm2, %v40_v50  ;;  %v352_v50 = vld [vmem:[#allocation3 + $0x1f8] sm:$0xff] }
  0x8b   :  { %v47_v51 = vpop.permute.xlu0 %46 }
  0x8c   :  { %50 = vst.msk [vmem:[#allocation2] sm:$0xff] %vm49_vm3, %v47_v51  ;;  %v744_v51 = vpack.c.bf16 %v352_v50, %v351_v49 }
  0x8d   :  { %52 = vst.msk [vmem:[#allocation2] sm:$0xff] %vm51_vm4, %v785_v1 }
  0x94   :  { %v53_v52 = vld [vmem:[#allocation2] sm:$0xff] }
  0x95   :  { %543 = vmatmul.mubr.f32.vlgmr.msra.gmra.mrb[0].mxu0 %v53_v52  ;;  %v440_v52 = vld [vmem:[%s899_s4 + $0x2] ss:$0 sm:$0xff] }
  0x96   :  { %612 = vmatprep.mubr.msk.f32.mxu0 %vm784_vm0, %v785_v1  ;;  %700 = vmatpush3.bf16.msra.mxu0 %v699_v59 }
  0x97   :  { %701 = vmatprep.subr.bf16.mxu0 %v783_v0 }
  0x9a   :  { %703 = vmatpush3.bf16.msra.mxu0 %v702_v61 }
  0x9b   :  { %704 = vmatprep.subr.bf16.mxu0 %v783_v0 }
  0x9e   :  { %706 = vmatpush3.bf16.msra.mxu0 %v705_v2 }
  0x9f   :  { %707 = vmatprep.subr.bf16.mxu0 %v783_v0 }
  0xa2   :  { %709 = vmatpush3.bf16.msra.mxu0 %v708_v5 }
  0xa3   :  { %710 = vmatprep.subr.bf16.mxu0 %v783_v0 }
  0xa6   :  { %712 = vmatpush3.bf16.msra.mxu0 %v711_v8 }
  0xa7   :  { %713 = vmatprep.subr.bf16.mxu0 %v783_v0 }
  0xaa   :  { %715 = vmatpush3.bf16.msra.mxu0 %v714_v11 }
  0xab   :  { %716 = vmatprep.subr.bf16.mxu0 %v783_v0 }
  0xae   :  { %718 = vmatpush3.bf16.msra.mxu0 %v717_v19 }
  0xaf   :  { %719 = vmatprep.subr.bf16.mxu0 %v783_v0 }
  0xb2   :  { %721 = vmatpush3.bf16.msra.mxu0 %v720_v22 }
 0x168   :  { %v143_v13 = vpop.f32.mrb[0].mxu0 }
 0x169   :  { %v144_v14 = vadd.f32 %v438_v12, %v143_v13  ;;  %v544_v15 = vpop.f32.mrb[1].mxu0 }
 0x16b   :  { %v147_v16 = vmax.f32 %v144_v14, 0.0 }
 0x16d   :  { %578 = vmatmul.mubr.f32.vlgmr.msra.gmra.mrb[0].mxu1 %v147_v16 }
 0x16e   :  { %647 = vmatprep.mubr.msk.f32.mxu1 %vm784_vm0, %v785_v1  ;;  %724 = vmatpush3.bf16.msra.mxu1 %v723_v26  ;;  %v341_v1 = vld [vmem:[#allocation3 + $0x98] sm:$0xff] }
 0x16f   :  { %725 = vmatprep.subr.bf16.mxu1 %v783_v0  ;;  %v729_v30 = vpack.c.bf16 %v342_v29, %v341_v1 }
 0x172   :  { %727 = vmatpush3.bf16.msra.mxu1 %v726_v28 }
 0x173   :  { %728 = vmatprep.subr.bf16.mxu1 %v783_v0 }
 0x176   :  { %730 = vmatpush3.bf16.msra.mxu1 %v729_v30 }
 0x177   :  { %731 = vmatprep.subr.bf16.mxu1 %v783_v0 }
 0x17a   :  { %733 = vmatpush3.bf16.msra.mxu1 %v732_v33 }
 0x17b   :  { %734 = vmatprep.subr.bf16.mxu1 %v783_v0 }
 0x17e   :  { %736 = vmatpush3.bf16.msra.mxu1 %v735_v36 }
 0x17f   :  { %737 = vmatprep.subr.bf16.mxu1 %v783_v0 }
 0x182   :  { %739 = vmatpush3.bf16.msra.mxu1 %v738_v39 }
 0x183   :  { %740 = vmatprep.subr.bf16.mxu1 %v783_v0 }
 0x186   :  { %742 = vmatpush3.bf16.msra.mxu1 %v741_v42 }
 0x187   :  { %743 = vmatprep.subr.bf16.mxu1 %v783_v0 }
 0x18a   :  { %745 = vmatpush3.bf16.msra.mxu1 %v744_v51 }
 0x240   :  { %v237_v44 = vpop.f32.mrb[0].mxu1 }
 0x241   :  { %v238_v45 = vadd.f32 %v439_v43, %v237_v44  ;;  %v579_v46 = vpop.f32.mrb[1].mxu1 }
 0x243   :  { %v241_v47 = vmax.f32 %v238_v45, 0.0 }
 0x245   :  { %v242_v48 = vadd.f32 %v241_v47, %v147_v16 }
 0x247   :  { %613 = vmatmul.mubr.f32.vlgmr.msra.gmra.mrb[2].mxu0 %v242_v48 }
 0x31a   :  { %v332_v53 = vpop.f32.mrb[2].mxu0 }
 0x31b   :  { %v333_v0 = vadd.f32 %v440_v52, %v332_v53  ;;  %v614_v54 = vpop.f32.mrb[3].mxu0 }
 0x31d   :  { %v336_v55 = vmax.f32 %v333_v0, 0.0 }
 0x31f   :  { %648 = vmatmul.mubr.f32.vlgmr.msra.gmra.mrb[2].mxu1 %v336_v55 }
 0x3f2   :  { %v426_v57 = vpop.f32.mrb[2].mxu1 }
 0x3f3   :  { %v427_v58 = vadd.f32 %v441_v56, %v426_v57  ;;  %v649_v59 = vpop.f32.mrb[3].mxu1 }
 0x3f5   :  { %754 = vtanh.f32 %v427_v58 }
 0x3ff   :  { %v755_v60 = vpop.eup %754 }
 0x400   :  { %432 = vst.msk [vmem:[%s900_s5] sm:$0xff] %vm431_vm5, %v755_v60 }
 0x401   :  { %437 = vsyncpa [#allocation4], 1 }

</bundles_post_ra>
